<compile_context>
chip_gen: v5e
topology: v5e:2x2
jax: 0.10.0
libtpu: 0.0.40
codegen_flags: <defaults>
</compile_context>

<pallas_src>
import jax
import jax.numpy as jnp
from jax.experimental import pallas as pl
from jax.experimental.pallas import tpu as pltpu


def _round_up(x, m):
    return ((x + m - 1) // m) * m


def _cdiv(a, b):
    return (a + b - 1) // b


def _vmem_limit_bytes():
    """Request ~3/4 of physical VMEM, capped at 96 MiB.

    v5e/v6e (128 MiB physical) -> 96 MiB; v7x (64 MiB physical) -> 48 MiB,
    leaving headroom for Mosaic internal scratch/semaphores.
    """
    cap = 64 * 1024 * 1024
    try:
        info = pltpu.get_tpu_info()
        cap = int(getattr(info, "vmem_capacity_bytes", cap))
    except Exception:
        pass
    return max(32 * 1024 * 1024, min(cap * 3 // 4, 96 * 1024 * 1024))


def _bit_additive_bias_kernel(x_ref, w_ref, b_ref, o_ref):
    # x_ref: (tm, H_in)   token tile
    # w_ref: (H_in, tn)   weight column tile, stored (in, out)
    # b_ref: (1, tn)      folded f32 bias = linear bias + additive offset
    # o_ref: (tm, tn)     output tile
    x = x_ref[...]
    w = w_ref[...]
    if x.dtype != w.dtype:
        # In-vreg cast to the (pre-converted, e.g. bf16) weight dtype; avoids a
        # separate wrapper-side HBM cast pass over the activations.
        x = x.astype(w.dtype)
    y = jnp.dot(x, w, preferred_element_type=jnp.float32)
    o_ref[...] = (y + b_ref[...]).astype(o_ref.dtype)


def bit_additive_bias_linear(x, weight, bias, offsets=None, param_name="bias_offset",
                             expand_seq_axis=True, tm=512, tn=512):
    """Forward of BitAdditiveBias wrapping nn.Linear (eval mode).

    x:      (B, S, H_in) activations.
    weight: (H_in, H_out)  (torch Linear weight transposed). For the bf16 fast
            path, pre-convert this ONCE at model load; no per-call cast here.
    bias:   (H_out,) linear bias.
    offsets: optional {param_name: offset}. 1-D (H_out,) offsets are folded
            into the bias and fused into the kernel; higher-rank offsets are
            broadcast-added after the kernel (module's `output + bias`).
    """
    B, S, H_in = x.shape
    H_out = weight.shape[1]
    M = B * S
    out_dtype = x.dtype

    # ---- fold linear bias + additive offset in f32 (no pre-kernel downcast) --
    b_fold = bias.astype(jnp.float32)
    post_add = None
    if offsets is not None and param_name in offsets:
        off = jnp.asarray(offsets[param_name])
        if off.ndim == 1:
            b_fold = b_fold + off.astype(jnp.float32)
        else:
            # Per-batch / per-token offset: add after the kernel with the
            # module's expand_seq_axis broadcast semantics.
            post_add = off.reshape(-1, 1, off.shape[-1]) if expand_seq_axis else off
    b2d = b_fold.reshape(1, H_out)

    x2d = x.reshape(M, H_in)

    # ---- tile selection ------------------------------------------------------
    xb = x2d.dtype.itemsize
    wb = weight.dtype.itemsize
    ob = jnp.dtype(out_dtype).itemsize
    pack = max(8, 32 // xb)               # sublane pack: f32 -> 8, bf16 -> 16, i8 -> 32

    # N tile: largest 128-multiple <= tn that divides H_out; else full H_out.
    tn_eff = None
    cand = (min(tn, H_out) // 128) * 128
    while cand >= 128:
        if H_out % cand == 0:
            tn_eff = cand
            break
        cand -= 128
    if tn_eff is None:
        tn_eff = H_out                    # full-dim block (legal; masked lane stores)

    # M tile: pack-multiple; no padding — Pallas masks the partial edge block.
    tm_eff = max(pack, min(_round_up(tm, pack), _round_up(M, pack)))

    # Keep the double-buffered working set under the VMEM budget.
    vmem_limit = _vmem_limit_bytes()
    budget = int(vmem_limit * 0.8)        # headroom for Mosaic internal scratch

    def _ws(tm_, tn_):
        return 2 * (tm_ * H_in * xb + H_in * tn_ * wb + tm_ * tn_ * ob) + 2 * tn_ * 4

    while _ws(tm_eff, tn_eff) > budget and tm_eff > pack:
        tm_eff = max(pack, _round_up(tm_eff // 2, pack))
    while (_ws(tm_eff, tn_eff) > budget and tn_eff > 128
           and tn_eff % 256 == 0 and H_out % (tn_eff // 2) == 0):
        tn_eff //= 2
    # TODO(synk): for very large H_in (FFN down-proj) add a K grid axis with an
    # f32 VMEM accumulator + pl.when init/finalize instead of shrinking tiles.

    grid_m = _cdiv(M, tm_eff)
    grid_n = _cdiv(H_out, tn_eff)

    # Megacore (v7x): guarantee >=2 grid cells so both TensorCores get work.
    if grid_m * grid_n == 1:
        if H_out % 256 == 0:
            tn_eff = H_out // 2           # 128-aligned halves; no extra weight traffic
            grid_n = 2
        elif M > pack:
            tm_eff = max(pack, _round_up(_cdiv(M, 2), pack))
            grid_m = _cdiv(M, tm_eff)

    cost = pl.CostEstimate(
        flops=2 * M * H_in * H_out,
        transcendentals=0,
        bytes_accessed=int(M * H_in * xb + grid_m * H_in * H_out * wb + M * H_out * ob),
    )

    out2d = pl.pallas_call(
        _bit_additive_bias_kernel,
        out_shape=jax.ShapeDtypeStruct((M, H_out), out_dtype),
        grid_spec=pltpu.PrefetchScalarGridSpec(
            num_scalar_prefetch=0,
            grid=(grid_m, grid_n),
            in_specs=[
                pl.BlockSpec((tm_eff, H_in), lambda i, j: (i, 0)),   # x tile
                pl.BlockSpec((H_in, tn_eff), lambda i, j: (0, j)),   # weight tile
                pl.BlockSpec((1, tn_eff), lambda i, j: (0, j)),      # folded f32 bias
            ],
            out_specs=pl.BlockSpec((tm_eff, tn_eff), lambda i, j: (i, j)),
        ),
        compiler_params=pltpu.CompilerParams(
            dimension_semantics=("parallel", "parallel"),
            vmem_limit_bytes=vmem_limit,
        ),
        cost_estimate=cost,
    )(x2d, weight, b2d)

    out = out2d.reshape(B, S, H_out)
    if post_add is not None:
        out = out + post_add.astype(out.dtype)
    return out


if __name__ == "__main__":
    B, S, H = 2, 8, 128

    key = jax.random.PRNGKey(0)
    kx, kw, kb, ko, ko2 = jax.random.split(key, 5)

    # Deterministic "parameters" for the wrapped Linear module and the offset.
    x = jax.random.normal(kx, (B, S, H), dtype=jnp.float32)
    weight = jax.random.normal(kw, (H, H), dtype=jnp.float32) * 0.02   # (in, out)
    bias = jax.random.normal(kb, (H,), dtype=jnp.float32) * 0.02
    offset = jax.random.normal(ko, (H,), dtype=jnp.float32) * 0.1
    offsets = {"bias_offset": offset}

    # "Model load"-time bf16 weight conversion (hoisted out of the call path).
    weight_bf16 = weight.astype(jnp.bfloat16)

    # Pure-JAX references.
    ref = x @ weight + bias.reshape(1, 1, H) + offset.reshape(1, 1, H)
    ref_no_off = x @ weight + bias.reshape(1, 1, H)

    # f32 path (accuracy-preserving).
    out = jax.block_until_ready(
        bit_additive_bias_linear(x, weight, bias, offsets=offsets,
                                 param_name="bias_offset", expand_seq_axis=True))
    assert out.shape == (B, S, H)
    assert jnp.allclose(out, ref, atol=1e-4, rtol=1e-4)

    # Path without offsets: plain wrapped-module output.
    out_no_off = jax.block_until_ready(
        bit_additive_bias_linear(x, weight, bias, offsets=None))
    assert jnp.allclose(out_no_off, ref_no_off, atol=1e-4, rtol=1e-4)

    # bf16-operand path (v5e/v6e/v7x MXU + halved weight DMA); f32 accumulate.
    out_bf16 = jax.block_until_ready(
        bit_additive_bias_linear(x, weight_bf16, bias, offsets=offsets))
    assert jnp.allclose(out_bf16.astype(jnp.float32), ref, atol=2e-2, rtol=2e-2)

    # Ragged M (B*S not a multiple of the tile): exercises the masked edge
    # block instead of the old pad/slice path.
    S2 = 7
    x2 = jax.random.normal(kx, (B, S2, H), dtype=jnp.float32)
    ref2 = x2 @ weight + bias.reshape(1, 1, H) + offset.reshape(1, 1, H)
    out2 = jax.block_until_ready(
        bit_additive_bias_linear(x2, weight, bias, offsets=offsets))
    assert out2.shape == (B, S2, H)
    assert jnp.allclose(out2, ref2, atol=1e-4, rtol=1e-4)

    # Per-batch offset (rank > 1) path: added post-kernel like `output + bias`.
    off_b = jax.random.normal(ko2, (B, H), dtype=jnp.float32) * 0.1
    ref3 = x @ weight + bias.reshape(1, 1, H) + off_b[:, None, :]
    out3 = jax.block_until_ready(
        bit_additive_bias_linear(x, weight, bias, offsets={"bias_offset": off_b},
                                 expand_seq_axis=True))
    assert jnp.allclose(out3, ref3, atol=1e-4, rtol=1e-4)

    print("KERNEL_OK")
</pallas_src>

<mosaic_0001>
module attributes {stable_mosaic.version = 11 : i64} {
  func.func @_bit_additive_bias_kernel(%arg0: i32, %arg1: i32, %arg2: memref<8x128xf32, #tpu.memory_space<vmem>>, %arg3: memref<128x128xf32, #tpu.memory_space<vmem>>, %arg4: memref<1x128xf32, #tpu.memory_space<vmem>>, %arg5: memref<8x128xf32, #tpu.memory_space<vmem>>) attributes {dimension_semantics = [#tpu.dimension_semantics<parallel>, #tpu.dimension_semantics<parallel>], iteration_bounds = array<i64: 2, 1>, scalar_prefetch = 0 : i64, scratch_operands = 0 : i64, tpu.core_type = #tpu.core_type<tc>, window_params = [{transform_indices = @transform_0, window_bounds = array<i64: 8, 128>}, {transform_indices = @transform_1, window_bounds = array<i64: 128, 128>}, {transform_indices = @transform_2, window_bounds = array<i64: 1, 128>}, {transform_indices = @transform_3, window_bounds = array<i64: 8, 128>}]} {
    %c0 = arith.constant 0 : index
    %c0_0 = arith.constant 0 : index
    %0 = vector.load %arg2[%c0, %c0_0] : memref<8x128xf32, #tpu.memory_space<vmem>>, vector<8x128xf32>
    %c0_1 = arith.constant 0 : index
    %c0_2 = arith.constant 0 : index
    %1 = vector.load %arg3[%c0_1, %c0_2] : memref<128x128xf32, #tpu.memory_space<vmem>>, vector<128x128xf32>
    %cst = arith.constant dense<0.000000e+00> : vector<8x128xf32>
    %2 = tpu.matmul %0, %1, %cst {dimension_numbers = #tpu.dot_dimension_numbers<[1], [0], [0], [1], [0, 0, 1, 1], [], []>} : vector<8x128xf32>, vector<128x128xf32>, vector<8x128xf32> -> vector<8x128xf32>
    %c0_3 = arith.constant 0 : index
    %c0_4 = arith.constant 0 : index
    %3 = vector.load %arg4[%c0_3, %c0_4] : memref<1x128xf32, #tpu.memory_space<vmem>>, vector<1x128xf32>
    %4 = vector.broadcast %3 : vector<1x128xf32> to vector<8x128xf32>
    %5 = arith.addf %2, %4 : vector<8x128xf32>
    %c0_5 = arith.constant 0 : index
    %c0_6 = arith.constant 0 : index
    %6 = vector.load %arg5[%c0_5, %c0_6] : memref<8x128xf32, #tpu.memory_space<vmem>>, vector<8x128xf32>
    tpu.vector_store %arg5[%c0_5, %c0_6], %5 {strides = array<i32>} : memref<8x128xf32, #tpu.memory_space<vmem>>, vector<8x128xf32>,
    return
  }
  func.func @transform_0(%arg0: i32, %arg1: i32) -> (i32, i32) {
    %c0_i32 = arith.constant 0 : i32
    %c0_i32_0 = arith.constant 0 : i32
    return %arg0, %c0_i32 : i32, i32
  }
  func.func @transform_1(%arg0: i32, %arg1: i32) -> (i32, i32) {
    %c0_i32 = arith.constant 0 : i32
    %c0_i32_0 = arith.constant 0 : i32
    return %c0_i32, %arg1 : i32, i32
  }
  func.func @transform_2(%arg0: i32, %arg1: i32) -> (i32, i32) {
    %c0_i32 = arith.constant 0 : i32
    %c0_i32_0 = arith.constant 0 : i32
    return %c0_i32, %arg1 : i32, i32
  }
  func.func @transform_3(%arg0: i32, %arg1: i32) -> (i32, i32) {
    %c0_i32 = arith.constant 0 : i32
    return %arg0, %arg1 : i32, i32
  }
}

</mosaic_0001>

<bundles_post_ra>
// kernel: tpu_custom_call.1
= control target key start
LH: loop header
LB: loop body
LE: loop exit
PB: predicated region body
PF: predicated region fallthrough
CT: control target
= control target key end

     0   :  { %8 = vsyncpa [#allocation3], 0  ;;  %s818_s0 = inlined_call_operand.hbm [shape: f32[16,128], index: 0, kind: input, shape index: {}]   ;;  %s819_s1 = inlined_call_operand.hbm [shape: f32[128,128], index: 1, kind: input, shape index: {}]   ;;  %s820_s2 = inlined_call_operand.vmem [shape: f32[1,128], index: 2, kind: input, shape index: {}]   ;;  %s821_s3 = inlined_call_operand.hbm [shape: f32[16,128], index: 3, kind: output, shape index: {}]  }
   0x1   :  { %10 = vsyncpa [#allocation3 + $0x1], 0 }
   0x2   :  { %11 = vsyncpa [#allocation6], 0 }
   0x3   :  { %12 = vsyncpa [#allocation4], 0 }
   0x4   :  { %14 = vsyncpa [#allocation4 + $0x1], 0  ;;  %s665_s12 = smov 0   ;;  %s667_s13 = smov 0  }
   0x5   :  { %s669_s14 = smov 0   ;;  %s671_s15 = smov 0  }
   0x6   :  { %s673_s16 = smov 0   ;;  %s675_s17 = smov 0  }
   0x7 LB: > { %s402_s18 = sadd.s32 4294967295, %s640_s17   ;;  %p404_p0 = scmp.ge.s32.totalorder %s640_s17, 1  ;;  %s640_s17 = sphi %s675_s17, %s20_s17   ;;  %s636_s16 = sphi %s673_s16, %s832_s16   ;;  %s632_s15 = sphi %s671_s15, %s831_s15   ;;  %s628_s14 = sphi %s669_s14, %s830_s14   ;;  %s624_s13 = sphi %s667_s13, %s829_s13   ;;  %s620_s12 = sphi %s665_s12, %s828_s12  }
   0x8   : > { %p697_p1 = scmp.eq.s32.totalorder %s402_s18, 0  ;;  %p143_p2 = scmp.lt.s32.totalorder %s640_s17, 3 }
   0x9   : > { %s156_s22 = sshll.u32 %s819_s1, 4  ;;  %s642_s24 = smov [#allocation5]   ;;  %s157_s22 = int_to_ptr.hbm [resolvable:$true] %s156_s22 }
   0xa   : > { %p705_p3 = pnand %p404_p0, %p143_p2  ;;  %s158_s25 = sshll.u32 %s642_s24, 4  ;;  %s159_s25 = int_to_ptr.vmem [resolvable:$true] %s158_s25 }
   0xb   : > { %p407_p6 = scmp.ge.s32.totalorder %s640_s17, 2  ;;  %s643_s26 = smov 128  }
   0xc   : > { %p426_p4 = pneg %p705_p3  ;;  %s644_s27 = smov 8  }
   0xd   : > { %s403_s28 = sadd.s32 4294967294, %s640_s17   ;;  %s32_s29 = sadd.s32 1, %s636_s16 }
   0xe   : > { %p427_p5 = pnand %p426_p4, %p697_p1  ;;  %s39_s30 = sadd.s32 1, %s628_s14 }
   0xf   : > { %p34_p7 = scmp.ge.s32.totalorder %s32_s29, 2  ;;  %p46_p8 = scmp.ne.s32.totalorder %s628_s14, %s624_s13 }
  0x10   : > { %429 = dma.hbm_to_vmem [thread:$0]  (!%p427_p5), %s157_s22, 2048, %s159_s25, [#allocation6], %s643_s26, %s643_s26, %s644_s27  }
  0x11   : > { %p47_p9 = scmp.eq.s32.totalorder %s640_s17, 0  ;;  %p52_p10 = scmp.ne.s32.totalorder %s624_s13, %s620_s12 }
  0x12   : > { %s834_s29 = smov (%p34_p7, %s32_s29), 0  ;;  %p130_p13 = scmp.eq.s32.totalorder %s402_s18, 1 }
  0x13   : > { %p724_p11 = por %p47_p9, %p46_p8  ;;  %p730_p12 = por %p697_p1, %p52_p10 }
  0x14   : > { %s36_s6 = ssub.s32 %s636_s16, %s834_s29  ;;  %p136_p2 = scmp.eq.s32.totalorder %s403_s28, 1 }
  0x15   : > { %p37_p0 = scmp.eq.s32.totalorder %s36_s6, 0  ;;  %p736_p4 = por %p130_p13, %p46_p8 }
  0x16   : > { %p439_p5 = scmp.lt.s32.totalorder %s640_s17, 2  ;;  %p744_p7 = por %p136_p2, %p52_p10 }
  0x17   : > { %s742_s8 = scalar_select %p37_p0, %s628_s14, %s39_s30  }
  0x18   : > { %s178_s10 = sand.u32 1, %s628_s14   ;;  %s409_s20 = sshll.u32 %s636_s16, 3 }
  0x19   : > { %s408_s11 = sshll.u32 %s178_s10, 3  ;;  %s186_s18 = scalar_lea.hbm %s818_s0, %s409_s20 }
  0x1a   : > { %s182_s24 = scalar_lea.vmem [#allocation2], %s408_s11  ;;  %s188_s26 = sshll.u32 %s186_s18, 4  ;;  %s189_s26 = int_to_ptr.hbm [resolvable:$true] %s188_s26 }
  0x1b   : > { %s190_s25 = sshll.u32 %s182_s24, 4  ;;  %p431_p8 = pnand %p439_p5, %p724_p11  ;;  %s191_s25 = int_to_ptr.vmem [resolvable:$true] %s190_s25 }
  0x1c   : > { %s179_s27 = scalar_lea.sflag [#allocation3], %s178_s10  ;;  %199 = sbr.rel (%p705_p3) target bundleno = 199 (0xc7), region = 32 }
  0x1d   : > { %433 = dma.hbm_to_vmem [thread:$0]  (!%p431_p8), %s189_s26, 128, %s191_s25, %s179_s27  }
  0x1e   : > { %s758_s28 = sand.u32 (!%p705_p3), 1, %s624_s13  }
  0x1f   : > { %s411_s30 = sshll.u32 (!%p705_p3), %s758_s28, 3  ;;  %s202_s6 = scalar_lea.sflag (!%p705_p3), [#allocation3], %s758_s28 }
  0x20   : > { %s764_s11 = scalar_lea.vmem (!%p705_p3), [#allocation2], %s411_s30 }
  0x21   : > { %607 = dma.done.wait (%p730_p12), %s202_s6, 128  }
  0x22   : > { %609 = vsyncadd (%p730_p12), %s202_s6, 4294967168 }
  0x23   : > { %611 = dma.done.wait (%p697_p1), [#allocation6], 2048  }
  0x24   : > { %613 = vsyncadd (%p697_p1), [#allocation6], 4294965248  ;;  %v256_v0 = vld [vmem:[#allocation5 + $0x78] sm:$0xff]  ;;  %v255_v1 = vld [vmem:[#allocation5 + $0x70] sm:$0xff]  ;;  %s415_s19 = sshll.u32 %s632_s15, 3  ;;  %s236_s21 = scalar_lea.vmem [#allocation7], %s411_s30 }
  0x25   : > { %261 = vmatpush.msra.mxu0 %v256_v0  ;;  %v254_v2 = vld [vmem:[#allocation5 + $0x68] sm:$0xff]  ;;  %v253_v3 = vld [vmem:[#allocation5 + $0x60] sm:$0xff]  ;;  %v252_v4 = vld [vmem:[#allocation5 + $0x58] sm:$0xff]  ;;  %s294_s5 = scalar_lea.hbm %s821_s3, %s415_s19  ;;  %s296_s22 = sshll.u32 %s236_s21, 4  ;;  %s297_s22 = int_to_ptr.vmem [resolvable:$true] %s296_s22 }
  0x26   : > { %v251_v5 = vld [vmem:[#allocation5 + $0x50] sm:$0xff]  ;;  %v250_v6 = vld [vmem:[#allocation5 + $0x48] sm:$0xff]  ;;  %v249_v7 = vld [vmem:[#allocation5 + $0x40] sm:$0xff]  ;;  %s298_s18 = sshll.u32 %s294_s5, 4  ;;  %s283_s24 = scalar_lea.sflag [#allocation4], %s758_s28  ;;  %s299_s18 = int_to_ptr.hbm [resolvable:$true] %s298_s18 }
  0x27   : > { %262 = vmatpush.msra.mxu0 %v255_v1  ;;  %v248_v8 = vld [vmem:[#allocation5 + $0x38] sm:$0xff]  ;;  %v247_v9 = vld [vmem:[#allocation5 + $0x30] sm:$0xff]  ;;  %v246_v10 = vld [vmem:[#allocation5 + $0x28] sm:$0xff]  ;;  %s568_s15 = sshra.s32 %s299_s18, 4  ;;  %s574_s6 = scalar_lea.hbm %s821_s3, 16  ;;  %s569_s15 = int_to_ptr.hbm [resolvable:$true] %s568_s15 }
  0x28   : > { %v245_v11 = vld [vmem:[#allocation5 + $0x20] sm:$0xff]  ;;  %v244_v12 = vld [vmem:[#allocation5 + $0x18] sm:$0xff]  ;;  %v243_v13 = vld [vmem:[#allocation5 + $0x10] sm:$0xff]  ;;  %s570_s25 = scalar_lea.hbm %s569_s15, 8  ;;  %p575_p10 = scmp.lt.s32.totalorder %s569_s15, %s821_s3 }
  0x29   : > { %263 = vmatpush.msra.mxu0 %v254_v2  ;;  %v242_v14 = vld [vmem:[#allocation5 + $0x8] sm:$0xff]  ;;  %v241_v15 = vld [vmem:[#allocation5] sm:$0xff]  ;;  %v240_v16 = vld [vmem:[%s764_s11] sm:$0xff]  ;;  %p571_p1 = scmp.ne.s32.totalorder %s569_s15, %s570_s25  ;;  %p576_p11 = scmp.lt.s32.totalorder %s574_s6, %s570_s25 }
  0x2a   : > { %v493_v17 = vld [vmem:[%s820_s2] ss:$0 sm:$0xff] }
  0x2b   : > { %264 = vmatpush.msra.mxu0 %v253_v3  ;;  %p572_p3 = pnand %p571_p1, %p736_p4  ;;  %p577_p12 = por %p576_p11, %p575_p10 }
  0x2d   : > { %265 = vmatpush.msra.mxu0 %v252_v4  ;;  %p573_p9 = pneg %p572_p3 }
  0x2f   : > { %266 = vmatpush.msra.mxu0 %v251_v5  ;;  %p578_p13 = pnand %p577_p12, %p573_p9 }
  0x31   : > { %267 = vmatpush.msra.mxu0 %v250_v6 }
  0x33   : > { %268 = vmatpush.msra.mxu0 %v249_v7 }
  0x35   : > { %269 = vmatpush.msra.mxu0 %v248_v8 }
  0x37   : > { %270 = vmatpush.msra.mxu0 %v247_v9 }
  0x39   : > { %271 = vmatpush.msra.mxu0 %v246_v10 }
  0x3b   : > { %272 = vmatpush.msra.mxu0 %v245_v11 }
  0x3d   : > { %273 = vmatpush.msra.mxu0 %v244_v12 }
  0x3f   : > { %274 = vmatpush.msra.mxu0 %v243_v13 }
  0x41   : > { %275 = vmatpush.msra.mxu0 %v242_v14 }
  0x43   : > { %276 = vmatpush.msra.mxu0 %v241_v15 }
  0x44   : > { %277 = vmatmul.f32.vlgmr.msra.gmra.mxu0 %v240_v16 }
  0xc1   : > { %v278_v18 = vpop.f32.mrf.mxu0 }
  0xc2   : > { %v279_v19 = vadd.f32 %v493_v17, %v278_v18 }
  0xc4   : > { %281 = vst [vmem:[%s236_s21] sm:$0xff] %v279_v19 }
  0xc5   : > { %581 = shalt.err (!%p578_p13)
}
  0xc6   : > { %424 = dma.vmem_to_hbm [thread:$0]  (%p736_p4), %s297_s22, 128, %s299_s18, %s283_s24  }
  0xc7 PF: > { %s310_s28 = sand.u32 1, %s620_s12   ;;  %p435_p0 = pnand %p407_p6, %p744_p7 }
  0xc8   : > { %s311_s19 = scalar_lea.sflag [#allocation4], %s310_s28 }
  0xc9   : > { %p436_p2 = pneg %p435_p0 }
  0xcb   : > { %615 = dma.done.wait (%p436_p2), %s311_s19, 128  }
  0xcc   : > { %617 = vsyncadd (%p436_p2), %s311_s19, 4294967168  ;;  %s20_s17 = sadd.s32 1, %s640_s17   ;;  %s828_s12 = smov %s624_s13 }
  0xcd   : > { %p17_p5 = scmp.ge.s32.totalorder %s20_s17, 4   ;;  %s829_s13 = smov %s628_s14 }
  0xce   : > { %s830_s14 = smov %s742_s8  ;;  %s831_s15 = smov %s636_s16 }
  0xcf   : > { %s832_s16 = smov %s834_s29  ;;  %19 = sbr.rel (!%p17_p5) target bundleno = 7 (0x7), region = 85 }
  0xd4   :  { %317 = vsyncpa [#allocation3], 1 }
  0xd5   :  { %319 = vsyncpa [#allocation3 + $0x1], 1 }
  0xd6   :  { %320 = vsyncpa [#allocation6], 1 }
  0xd7   :  { %321 = vsyncpa [#allocation4], 1 }
  0xd8   :  { %323 = vsyncpa [#allocation4 + $0x1], 1 }

</bundles_post_ra>
